<compile_context>
chip_gen: v6e
topology: v6e:2x2x1
jax: 0.10.0
libtpu: 0.0.40
codegen_flags: <defaults>
</compile_context>

<pallas_src>
import functools

import jax
import jax.numpy as jnp
from jax.experimental import pallas as pl
from jax.experimental.pallas import tpu as pltpu


def _patch_embed_kernel(x_ref, w_ref, b_ref, o_ref):
    # x_ref: (tm, K) bf16 | w_ref: (K, tn) bf16 | b_ref: (1, tn) f32 | o_ref: (tm, tn) f32
    acc = jnp.dot(x_ref[...], w_ref[...], preferred_element_type=jnp.float32)
    o_ref[...] = (acc + b_ref[...]).astype(o_ref.dtype)


def _round_up(a, b):
    return (a + b - 1) // b * b


@functools.partial(jax.jit, static_argnames=("patch_size",))
def tokenizer_audio_forward(x, weight, bias, patch_size):
    """Equivalent of Tokenizer_audio.forward.

    x:      (B, C, H, W)   NCHW, float32
    weight: (E, C, p, p)   PyTorch Conv2d weight layout
    bias:   (E,)
    returns (B, num_patches, E) float32
    """
    B, C, H, W = x.shape
    p = patch_size
    E = weight.shape[0]
    Hp, Wp = H // p, W // p
    N = Hp * Wp
    K = C * p * p
    M = B * N

    # Conv2d with stride == kernel floors any remainder; crop to the covered region.
    x = x[:, :, : Hp * p, : Wp * p]

    # im2col: non-overlapping patches, inner (c, ph, pw) order matches the flattening
    # of the Conv2d weight (E, C, p, p) -> (E, K).  Cast to bf16 (halves DMA bytes,
    # native MXU dtype); accumulation below stays f32.
    patches = (
        x.reshape(B, C, Hp, p, Wp, p)
        .transpose(0, 2, 4, 1, 3, 5)
        .reshape(M, K)
        .astype(jnp.bfloat16)
    )
    w2 = weight.reshape(E, K).T.astype(jnp.bfloat16)       # (K, E)
    b2 = bias.astype(jnp.float32).reshape(1, E)             # (1, E)

    # --- tiling ---------------------------------------------------------------
    # Pad K to a lane-dense multiple of 128 (zeros don't change the matmul).
    K_pad = _round_up(K, 128)
    # tm: big M tile for MXU row occupancy / fewer grid steps; shrink for tiny M.
    if M >= 512:
        tm = 512
    elif M >= 256:
        tm = 256
    else:
        tm = _round_up(M, 8)
    M_pad = _round_up(M, tm)
    # tn: single E tile when it fits comfortably in VMEM (typical embed_dim 768/1024),
    # so every operand is read exactly once; otherwise tile at 512 (lane-dense stores).
    E_pad128 = _round_up(E, 128)
    tn = E_pad128 if E_pad128 <= 1024 else 512
    E_pad = _round_up(E, tn)

    if M_pad != M or K_pad != K:
        patches = jnp.pad(patches, ((0, M_pad - M), (0, K_pad - K)))
    if E_pad != E or K_pad != K:
        w2 = jnp.pad(w2, ((0, K_pad - K), (0, E_pad - E)))
    if E_pad != E:
        b2 = jnp.pad(b2, ((0, 0), (0, E_pad - E)))

    n_e = E_pad // tn
    n_m = M_pad // tm

    flops = 2 * M_pad * K_pad * E_pad
    bytes_accessed = (
        n_e * M_pad * K_pad * 2    # bf16 patches (re-read once per E tile)
        + K_pad * E_pad * 2        # bf16 weights (E outer -> read once)
        + E_pad * 4                # f32 bias
        + M_pad * E_pad * 4        # f32 output
    )

    out = pl.pallas_call(
        _patch_embed_kernel,
        out_shape=jax.ShapeDtypeStruct((M_pad, E_pad), jnp.float32),
        grid=(n_e, n_m),  # E axis OUTER: weight block index constant across inner M axis
        in_specs=[
            pl.BlockSpec((tm, K_pad), lambda e, i: (i, 0)),
            pl.BlockSpec((K_pad, tn), lambda e, i: (0, e)),
            pl.BlockSpec((1, tn), lambda e, i: (0, e)),
        ],
        out_specs=pl.BlockSpec((tm, tn), lambda e, i: (i, e)),
        compiler_params=pltpu.CompilerParams(
            dimension_semantics=("parallel", "parallel"),
            allow_input_fusion=[True, True, True],
        ),
        cost_estimate=pl.CostEstimate(
            flops=flops, bytes_accessed=bytes_accessed, transcendentals=0
        ),
    )(patches, w2, b2)

    return out[:M, :E].reshape(B, N, E)


if __name__ == "__main__":
    # Small shapes consistent with the module (img_size, patch_size, in_chans, embed_dim).
    B, C, H, W = 2, 3, 32, 32
    patch_size = 8
    embed_dim = 128

    key = jax.random.PRNGKey(0)
    kx, kw, kb = jax.random.split(key, 3)
    x = jax.random.normal(kx, (B, C, H, W), dtype=jnp.float32)
    weight = (
        jax.random.normal(kw, (embed_dim, C, patch_size, patch_size), dtype=jnp.float32)
        * 0.02
    )
    bias = jax.random.normal(kb, (embed_dim,), dtype=jnp.float32) * 0.02

    out = tokenizer_audio_forward(x, weight, bias, patch_size)
    out = jax.block_until_ready(out)

    # Pure-JAX conv reference (same semantics as PyTorch Conv2d patch embedding).
    ref = jax.lax.conv_general_dilated(
        x,
        weight,
        window_strides=(patch_size, patch_size),
        padding="VALID",
        dimension_numbers=("NCHW", "OIHW", "NCHW"),
    ) + bias.reshape(1, embed_dim, 1, 1)
    ref = ref.reshape(B, embed_dim, -1).transpose(0, 2, 1)  # .flatten(2).transpose(1, 2)

    num_patches = (H // patch_size) * (W // patch_size)
    assert out.shape == (B, num_patches, embed_dim)
    # bf16 operands / f32 accumulation -> loose-but-meaningful tolerance vs f32 conv.
    assert jnp.allclose(out, ref, atol=2e-2, rtol=2e-2), (
        float(jnp.max(jnp.abs(out - ref)))
    )
    print("KERNEL_OK")
</pallas_src>

<mosaic_0001>
module attributes {stable_mosaic.version = 11 : i64} {
  func.func @_patch_embed_kernel(%arg0: i32, %arg1: i32, %arg2: memref<32x256xbf16, #tpu.memory_space<vmem>>, %arg3: memref<256x128xbf16, #tpu.memory_space<vmem>>, %arg4: memref<1x128xf32, #tpu.memory_space<vmem>>, %arg5: memref<32x128xf32, #tpu.memory_space<vmem>>) attributes {dimension_semantics = [#tpu.dimension_semantics<parallel>, #tpu.dimension_semantics<parallel>], iteration_bounds = array<i64: 1, 1>, scalar_prefetch = 0 : i64, scratch_operands = 0 : i64, tpu.core_type = #tpu.core_type<tc>, window_params = [{transform_indices = @transform_0, window_bounds = array<i64: 32, 256>}, {transform_indices = @transform_1, window_bounds = array<i64: 256, 128>}, {transform_indices = @transform_2, window_bounds = array<i64: 1, 128>}, {transform_indices = @transform_3, window_bounds = array<i64: 32, 128>}]} {
    %c0 = arith.constant 0 : index
    %c0_0 = arith.constant 0 : index
    %0 = vector.load %arg2[%c0, %c0_0] : memref<32x256xbf16, #tpu.memory_space<vmem>>, vector<32x256xbf16>
    %c0_1 = arith.constant 0 : index
    %c0_2 = arith.constant 0 : index
    %1 = vector.load %arg3[%c0_1, %c0_2] : memref<256x128xbf16, #tpu.memory_space<vmem>>, vector<256x128xbf16>
    %cst = arith.constant dense<0.000000e+00> : vector<32x128xf32>
    %2 = tpu.matmul %0, %1, %cst {dimension_numbers = #tpu.dot_dimension_numbers<[1], [0], [0], [1], [0, 0, 1, 1], [], []>} : vector<32x256xbf16>, vector<256x128xbf16>, vector<32x128xf32> -> vector<32x128xf32>
    %c0_3 = arith.constant 0 : index
    %c0_4 = arith.constant 0 : index
    %3 = vector.load %arg4[%c0_3, %c0_4] : memref<1x128xf32, #tpu.memory_space<vmem>>, vector<1x128xf32>
    %4 = vector.broadcast %3 : vector<1x128xf32> to vector<32x128xf32>
    %5 = arith.addf %2, %4 : vector<32x128xf32>
    %c0_5 = arith.constant 0 : index
    %c0_6 = arith.constant 0 : index
    %6 = vector.load %arg5[%c0_5, %c0_6] : memref<32x128xf32, #tpu.memory_space<vmem>>, vector<32x128xf32>
    tpu.vector_store %arg5[%c0_5, %c0_6], %5 {strides = array<i32>} : memref<32x128xf32, #tpu.memory_space<vmem>>, vector<32x128xf32>,
    return
  }
  func.func @transform_0(%arg0: i32, %arg1: i32) -> (i32, i32) {
    %c0_i32 = arith.constant 0 : i32
    %c0_i32_0 = arith.constant 0 : i32
    return %arg1, %c0_i32 : i32, i32
  }
  func.func @transform_1(%arg0: i32, %arg1: i32) -> (i32, i32) {
    %c0_i32 = arith.constant 0 : i32
    %c0_i32_0 = arith.constant 0 : i32
    return %c0_i32, %arg0 : i32, i32
  }
  func.func @transform_2(%arg0: i32, %arg1: i32) -> (i32, i32) {
    %c0_i32 = arith.constant 0 : i32
    %c0_i32_0 = arith.constant 0 : i32
    return %c0_i32, %arg0 : i32, i32
  }
  func.func @transform_3(%arg0: i32, %arg1: i32) -> (i32, i32) {
    %c0_i32 = arith.constant 0 : i32
    return %arg1, %arg0 : i32, i32
  }
}

</mosaic_0001>

<bundles_post_ra>
// kernel: tokenizer_audio_forward.2
= control target key start
LH: loop header
LB: loop body
LE: loop exit
PB: predicated region body
PF: predicated region fallthrough
CT: control target
= control target key end

     0   :  { %s1075_s0 = inlined_call_operand.vmem [shape: bf16[192,128], index: 0, kind: input, shape index: {}]   ;;  %s1076_s1 = inlined_call_operand.<no memory space> [shape: bf16[], index: 1, kind: input, shape index: {}]   ;;  %s1077_s2 = inlined_call_operand.vmem [shape: bf16[32,192], index: 2, kind: input, shape index: {}]   ;;  %s1078_s3 = inlined_call_operand.vmem [shape: f32[128], index: 3, kind: input, shape index: {}]   ;;  %s1079_s4 = inlined_call_operand.hbm [shape: f32[32,128], index: 4, kind: output, shape index: {}]  }
   0x1   :  { %v9_v0 = vstv %s1076_s1 }
   0x2   :  { %v1003_v1 = vunpack.i.l.bf16 %v9_v0 }
   0x3   :  { %v917_v3 = vld [vmem:[%s1075_s0 + $0x38] sm:$0xff]   ;;  %v920_v4 = vld [vmem:[%s1075_s0 + $0x30] sm:$0xff]   ;;  %v923_v5 = vld [vmem:[%s1075_s0 + $0x28] sm:$0xff]   ;;  %v51_v16 = vlaneseq }
   0x4   :  { %v840_v2 = vpack.c.bf16 %v1003_v1, %v1003_v1  ;;  %816 = vst [vmem:[#allocation15 + $0x38] sm:$0xff] %v917_v3   ;;  %811 = vst [vmem:[#allocation15 + $0x30] sm:$0xff] %v920_v4   ;;  %v926_v6 = vld [vmem:[%s1075_s0 + $0x20] sm:$0xff]   ;;  %v928_v7 = vld [vmem:[%s1075_s0 + $0x58] sm:$0xff]  }
   0x5   :  { %806 = vst [vmem:[#allocation15 + $0x28] sm:$0xff] %v923_v5   ;;  %801 = vst [vmem:[#allocation15 + $0x20] sm:$0xff] %v926_v6   ;;  %v930_v8 = vld [vmem:[%s1075_s0 + $0x18] sm:$0xff]   ;;  %v932_v9 = vld [vmem:[%s1075_s0 + $0x50] sm:$0xff]   ;;  %v52_v19 = vand.u32 127, %v51_v16 }
   0x6   :  { %856 = vst [vmem:[#allocation15 + $0x78] sm:$0xff] %v840_v2   ;;  %841 = vst [vmem:[#allocation15 + $0x60] sm:$0xff] %v840_v2   ;;  %v934_v10 = vld [vmem:[%s1075_s0 + $0x10] sm:$0xff]   ;;  %v936_v11 = vld [vmem:[%s1075_s0 + $0x48] sm:$0xff]  }
   0x7   :  { %846 = vst [vmem:[#allocation15 + $0x68] sm:$0xff] %v840_v2   ;;  %851 = vst [vmem:[#allocation15 + $0x70] sm:$0xff] %v840_v2   ;;  %v53_v22 = vadd.s32 128, %v52_v19  ;;  %v938_v25 = vld [vmem:[%s1075_s0 + $0x8] sm:$0xff]   ;;  %v940_v27 = vld [vmem:[%s1075_s0 + $0x40] sm:$0xff]  }
   0x8   :  { %836 = vst [vmem:[#allocation15 + $0x58] sm:$0xff] %v928_v7   ;;  %796 = vst [vmem:[#allocation15 + $0x18] sm:$0xff] %v930_v8   ;;  %v172_v28 = vld [vmem:[%s1075_s0] sm:$0xff]   ;;  %v732_v32 = vld [vmem:[%s1077_s2 + $0x8] sm:$0xf] }
   0x9   :  { %831 = vst [vmem:[#allocation15 + $0x50] sm:$0xff] %v932_v9   ;;  %791 = vst [vmem:[#allocation15 + $0x10] sm:$0xff] %v934_v10   ;;  %v26_v29 = vld [vmem:[%s1077_s2] sm:$0xf]  ;;  %v731_v30 = vld [vmem:[%s1077_s2 + $0x4] ss:$8 sps:$4 sm:$0xff]  }
   0xa   :  { %826 = vst [vmem:[#allocation15 + $0x48] sm:$0xff] %v936_v11   ;;  %786 = vst [vmem:[#allocation15 + $0x8] sm:$0xff] %v938_v25   ;;  %vm54_vm0 = vcmp.lt.s32.totalorder %v53_v22, 192  ;;  %v49_v31 = vunpack.c.l.bf16 %v731_v30  ;;  %v86_v33 = vunpack.c.h.bf16 %v731_v30  ;;  %v734_v34 = vld [vmem:[%s1077_s2 + $0x10] sm:$0xf] }
   0xb   :  { %v918_v13 = vld [vmem:[#allocation15 + $0x38] sm:$0xff]   ;;  %v921_v15 = vld [vmem:[#allocation15 + $0x30] sm:$0xff]   ;;  %821 = vst [vmem:[#allocation15 + $0x40] sm:$0xff] %v940_v27   ;;  %178 = vst [vmem:[#allocation15] sm:$0xff] %v172_v28  }
   0xc   :  { %v924_v18 = vld [vmem:[#allocation15 + $0x28] sm:$0xff]   ;;  %v927_v21 = vld [vmem:[#allocation15 + $0x20] sm:$0xff]   ;;  %37 = vst [vmem:[#allocation14] sm:$0xf] %v26_v29  ;;  %v735_v35 = vld [vmem:[%s1077_s2 + $0x14] ss:$8 sps:$4 sm:$0xff]  }
   0xd   :  { %v916_v12 = vld [vmem:[#allocation15 + $0x78] sm:$0xff]   ;;  %v925_v20 = vld [vmem:[#allocation15 + $0x60] sm:$0xff]   ;;  %74 = vst [vmem:[#allocation14 + $0x8] sm:$0xf] %v732_v32  ;;  %111 = vst [vmem:[#allocation14 + $0x10] sm:$0xf] %v734_v34  ;;  %v123_v36 = vunpack.c.l.bf16 %v735_v35  ;;  %v160_v38 = vunpack.c.h.bf16 %v735_v35 }
   0xe   :  { %868 = vmatprep.subr.bf16.mxu0 %v916_v12  ;;  %896 = vmatprep.subr.bf16.mxu1 %v916_v12  ;;  %v919_v14 = vld [vmem:[#allocation15 + $0x70] sm:$0xff]   ;;  %v922_v17 = vld [vmem:[#allocation15 + $0x68] sm:$0xff]   ;;  %v736_v37 = vld [vmem:[%s1077_s2 + $0x18] sm:$0xf] }
   0xf   :  { %869 = vmatpush3.bf16.msra.mxu0 %v918_v13  ;;  %904 = vmatpush3.bf16.msra.mxu1 %v918_v13  ;;  %v929_v23 = vld [vmem:[#allocation15 + $0x58] sm:$0xff]  }
  0x10   :  { %870 = vmatprep.subr.bf16.mxu0 %v919_v14  ;;  %897 = vmatprep.subr.bf16.mxu1 %v919_v14  ;;  %v931_v24 = vld [vmem:[#allocation15 + $0x18] sm:$0xff]   ;;  %v933_v26 = vld [vmem:[#allocation15 + $0x50] sm:$0xff]  }
  0x13   :  { %871 = vmatpush3.bf16.msra.mxu0 %v921_v15  ;;  %905 = vmatpush3.bf16.msra.mxu1 %v921_v15 }
  0x14   :  { %872 = vmatprep.subr.bf16.mxu0 %v922_v17  ;;  %898 = vmatprep.subr.bf16.mxu1 %v922_v17 }
  0x17   :  { %873 = vmatpush3.bf16.msra.mxu0 %v924_v18  ;;  %906 = vmatpush3.bf16.msra.mxu1 %v924_v18 }
  0x18   :  { %874 = vmatprep.subr.bf16.mxu0 %v925_v20  ;;  %899 = vmatprep.subr.bf16.mxu1 %v925_v20 }
  0x1b   :  { %875 = vmatpush3.bf16.msra.mxu0 %v927_v21  ;;  %907 = vmatpush3.bf16.msra.mxu1 %v927_v21 }
  0x1c   :  { %876 = vmatprep.subr.bf16.mxu0 %v929_v23  ;;  %900 = vmatprep.subr.bf16.mxu1 %v929_v23 }
  0x1d   :  { %19 = vsyncpa [#allocation13], 0  ;;  %v55_v39 = vsel %vm54_vm0, %v49_v31, %v1003_v1  ;;  %v92_v40 = vsel %vm54_vm0, %v86_v33, %v1003_v1  ;;  %148 = vst [vmem:[#allocation14 + $0x18] sm:$0xf] %v736_v37  ;;  %v935_v41 = vld [vmem:[#allocation15 + $0x10] sm:$0xff]   ;;  %v971_v42 = vmov 0.0   ;;  %v129_v45 = vsel %vm54_vm0, %v123_v36, %v1003_v1 }
  0x1e   :  { %v57_v43 = vpack.c.bf16 %v971_v42, %v55_v39  ;;  %v94_v44 = vpack.c.bf16 %v971_v42, %v92_v40  ;;  %v937_v46 = vld [vmem:[#allocation15 + $0x48] sm:$0xff]   ;;  %v131_v47 = vpack.c.bf16 %v971_v42, %v129_v45  ;;  %v166_v48 = vsel %vm54_vm0, %v160_v38, %v1003_v1  ;;  %v941_v51 = vld [vmem:[#allocation15 + $0x40] sm:$0xff]   ;;  %s972_s25 = smov [#allocation12]  }
  0x1f   :  { %877 = vmatpush3.bf16.msra.mxu0 %v931_v24  ;;  %908 = vmatpush3.bf16.msra.mxu1 %v931_v24  ;;  %v168_v49 = vpack.c.bf16 %v971_v42, %v166_v48  ;;  %v939_v50 = vld [vmem:[#allocation15 + $0x8] sm:$0xff]   ;;  %v942_v52 = vld [vmem:[#allocation15] sm:$0xff]   ;;  %s720_s26 = sshll.u32 %s972_s25, 4  ;;  %s721_s26 = int_to_ptr.vmem [resolvable:$true] %s720_s26 }
  0x20   :  { %878 = vmatprep.subr.bf16.mxu0 %v933_v26  ;;  %901 = vmatprep.subr.bf16.mxu1 %v933_v26  ;;  %60 = vst [vmem:[#allocation14 + $0x4] sm:$0xf] %v57_v43  ;;  %97 = vst [vmem:[#allocation14 + $0xc] sm:$0xf] %v94_v44  ;;  %v943_v53 = vld [vmem:[#allocation14] ss:$8 sps:$4 sm:$0xff]   ;;  %p954_p1 = scmp.lt.s32.totalorder %s721_s26, %s721_s26 }
  0x21   :  { %134 = vst [vmem:[#allocation14 + $0x14] sm:$0xf] %v131_v47  ;;  %171 = vst [vmem:[#allocation14 + $0x1c] sm:$0xf] %v168_v49  ;;  %v498_v57 = vld [vmem:[%s1078_s3] sm:$0x1] }
  0x22   :  { %501 = vst [vmem:[#allocation16] sm:$0x1] %v498_v57  ;;  %s949_s3 = scalar_lea.vmem %s721_s26, 512 }
  0x23   :  { %879 = vmatpush3.bf16.msra.mxu0 %v935_v41  ;;  %909 = vmatpush3.bf16.msra.mxu1 %v935_v41  ;;  %p950_p0 = scmp.ne.s32.totalorder %s721_s26, %s949_s3  ;;  %p955_p2 = scmp.lt.s32.totalorder %s949_s3, %s949_s3 }
  0x24   :  { %880 = vmatprep.subr.bf16.mxu0 %v937_v46  ;;  %902 = vmatprep.subr.bf16.mxu1 %v937_v46  ;;  %v946_v55 = vld [vmem:[#allocation14 + $0x10] ss:$8 sps:$4 sm:$0xff]  }
  0x25   :  { %p956_p3 = por %p955_p2, %p954_p1 }
  0x27   :  { %881 = vmatpush3.bf16.msra.mxu0 %v939_v50  ;;  %910 = vmatpush3.bf16.msra.mxu1 %v939_v50  ;;  %v945_v54 = vld [vmem:[#allocation14 + $0x4] ss:$8 sps:$4 sm:$0xff]   ;;  %p957_p4 = pnand %p956_p3, %p950_p0 }
  0x28   :  { %882 = vmatprep.subr.bf16.mxu0 %v941_v51  ;;  %903 = vmatprep.subr.bf16.mxu1 %v941_v51  ;;  %v948_v56 = vld [vmem:[#allocation14 + $0x14] ss:$8 sps:$4 sm:$0xff]  }
  0x29   :  { %694 = vmatprep.mubr.bf16.mxu0 %v945_v54  ;;  %702 = vmatprep.mubr.bf16.mxu1 %v948_v56  ;;  %v761_v60 = vld [vmem:[#allocation16] ss:$0 sm:$0xff] }
  0x2b   :  { %883 = vmatpush3.bf16.msra.mxu0 %v942_v52  ;;  %911 = vmatpush3.bf16.msra.mxu1 %v942_v52 }
  0x2e   :  { %695 = vmatmul.mubr.bf16.vlgmr.msra.gmra.mxu0 %v943_v53  ;;  %703 = vmatmul.mubr.bf16.vlgmr.msra.gmra.mxu1 %v946_v55 }
  0xee   :  { %v884_v58 = vpop.f32.mrf.mxu0  ;;  %v890_v59 = vpop.f32.mrf.mxu1 }
  0xf0   :  { %v885_v61 = vpop.f32.mrf.mxu0  ;;  %v891_v62 = vpop.f32.mrf.mxu1 }
  0xf1   :  { %v886_v63 = vadd.f32 %v885_v61, %v884_v58  ;;  %v892_v0 = vadd.f32 %v891_v62, %v890_v59 }
  0xf2   :  { %v887_v1 = vpop.f32.mrf.mxu0  ;;  %v893_v2 = vpop.f32.mrf.mxu1 }
  0xf3   :  { %v697_v3 = vadd.f32 %v886_v63, %v761_v60  ;;  %v705_v4 = vadd.f32 %v892_v0, %v761_v60 }
  0xf4   :  { %v888_v5 = vpop.f32.mrf.mxu0  ;;  %v894_v6 = vpop.f32.mrf.mxu1 }
  0xf5   :  { %711 = vst [vmem:[#allocation12] sm:$0xff] %v697_v3  ;;  %713 = vst [vmem:[#allocation12 + $0x10] sm:$0xff] %v705_v4  ;;  %v889_v7 = vadd.f32 %v888_v5, %v887_v1  ;;  %v895_v8 = vadd.f32 %v894_v6, %v893_v2 }
  0xf7   :  { %v700_v9 = vadd.f32 %v889_v7, %v761_v60  ;;  %v708_v10 = vadd.f32 %v895_v8, %v761_v60 }
  0xf9   :  { %712 = vst [vmem:[#allocation12 + $0x8] sm:$0xff] %v700_v9  ;;  %714 = vst [vmem:[#allocation12 + $0x18] sm:$0xff] %v708_v10 }
  0xfa   :  { %960 = shalt.err (!%p957_p4)
}
  0xfb   :  { %s973_s27 = smov 128   ;;  %s974_s28 = smov 8  }
  0xfc   :  { %726 = dma.vmem_to_hbm [thread:$0]  %s721_s26, 512, %s1079_s4, [#allocation13], %s973_s27, %s973_s27, %s974_s28  }
  0xfd   :  { %969 = dma.done.wait [#allocation13], 512  }
  0xfe   :  { %970 = vsyncadd [#allocation13], 4294966784 }
  0xff   :  { %730 = vsyncpa [#allocation13], 1 }

</bundles_post_ra>
